<compile_context>
chip_gen: v7x
topology: tpu7x:2x2x1
jax: 0.10.0
libtpu: 0.0.40
codegen_flags: <defaults>
</compile_context>

<pallas_src>
import functools

import jax
import jax.numpy as jnp
from jax.experimental import pallas as pl
from jax.experimental.pallas import tpu as pltpu


def dense_head_kernel(x_ref, wd_ref, bd_ref, wc_ref, bc_ref,
                      logits_ref, yhat_ref, *, label_num, block_batch):
    """One grid step: processes `block_batch` batch elements of shape [S, H]."""
    S = x_ref.shape[1]
    LP = wc_ref.shape[1]          # label dim padded to a multiple of 128 (lane-dense)

    # Weights are VMEM-resident across grid steps (constant index_maps); load once.
    wd = wd_ref[...]              # (H, H)  bf16
    bd = bd_ref[...]              # (1, H)  f32
    wc = wc_ref[...]              # (H, LP) bf16
    bc = bc_ref[...]              # (1, LP) f32

    # Static unroll over the batch elements of this block.  All slices are static, so
    # there are no in-kernel reshapes/relayouts; LLO interleaves EUP (tanh/exp) of one
    # element with MXU matmuls of the next.
    for i in range(block_batch):
        x_i = x_ref[i]                                             # (S, H) bf16

        # dense = nn.Linear(H, H); tanh   (f32 accumulation, f32 elementwise)
        h = jnp.tanh(
            jnp.dot(x_i, wd, preferred_element_type=jnp.float32) + bd
        )                                                          # (S, H) f32

        # classifier_head = nn.Linear(H, L) on the padded label dim
        z = (jnp.dot(h.astype(jnp.bfloat16), wc,
                     preferred_element_type=jnp.float32) + bc)     # (S, LP) f32

        # softmax over dim=1 of [B, S, L] == the sequence axis (axis 0 of z).
        # Padded label lanes are independent columns; their values never mix in.
        m = jnp.max(z, axis=0, keepdims=True)                      # (1, LP)
        e = jnp.exp(z - m)                                         # (S, LP)
        denom = jnp.sum(e, axis=0, keepdims=True)                  # (1, LP)
        inv = pl.reciprocal(denom, approx=True)                    # EUP slot
        logits_ref[i] = (e * inv).astype(logits_ref.dtype)         # 128-lane stores

        # argmax over labels from the exact log-space score (monotone in the softmax,
        # per-label denom included), independent of the approx reciprocal rounding.
        score = z - m - jnp.log(denom)                             # (S, LP)
        lane_ids = jax.lax.broadcasted_iota(jnp.int32, (S, LP), 1)
        score = jnp.where(lane_ids < label_num, score, -jnp.inf)   # mask padded labels
        row_max = jnp.max(score, axis=-1, keepdims=True)
        y_hat = jnp.min(jnp.where(score == row_max, lane_ids, LP), axis=-1)  # first-max
        yhat_ref[i] = y_hat                                        # (S,) int32


def _pick_block_batch(B, cap=8):
    """Largest divisor of B that is <= cap (prefers 8 at real batch sizes so the
    (Bt, S) y_hat block keeps the sublane tiling rule happy)."""
    if B <= cap:
        return B
    for d in range(cap, 0, -1):
        if B % d == 0:
            return d
    return 1


def _vmem_limit_bytes(Bt, S, H, LP):
    """Size the VMEM limit from the double-buffered footprint (not a flat constant)."""
    blocks = 2 * (Bt * S * H * 2        # x block (bf16), double-buffered
                  + Bt * S * LP * 4     # logits block (f32)
                  + Bt * S * 4)         # y_hat block (int32)
    weights = 2 * (H * H * 2 + H * LP * 2 + H * 4 + LP * 4)
    live = 2 * S * (H * 4 + 4 * LP * 4)     # in-flight h / z / e / score per element
    total = blocks + weights + live
    # clamp: >= 8 MiB for compiler scratch, <= 48 MiB (v7x physical VMEM is 64 MiB)
    return int(min(max(2 * total, 8 << 20), 48 << 20))


def ner_dense_head(x, wd, bd, wc, bc):
    """x: [B, S, H] f32; wd: [H, H]; bd: [1, H]; wc: [H, L]; bc: [1, L] (all f32)."""
    B, S, H = x.shape
    L = wc.shape[1]
    LP = ((L + 127) // 128) * 128        # pad label dim to full 128-lane stores
    Bt = _pick_block_batch(B)
    grid = (B // Bt,)

    # bf16 at the call boundary: halves x's HBM->VMEM bytes; biases stay f32.
    x_bf = x.astype(jnp.bfloat16)
    wd_bf = wd.astype(jnp.bfloat16)
    wc_pad = jnp.zeros((H, LP), jnp.bfloat16).at[:, :L].set(wc.astype(jnp.bfloat16))
    bc_pad = jnp.zeros((1, LP), jnp.float32).at[:, :L].set(bc)

    kernel = functools.partial(dense_head_kernel, label_num=L, block_batch=Bt)

    logits_pad, yhat = pl.pallas_call(
        kernel,
        out_shape=(
            jax.ShapeDtypeStruct((B, S, LP), jnp.float32),
            jax.ShapeDtypeStruct((B, S), jnp.int32),
        ),
        grid_spec=pltpu.PrefetchScalarGridSpec(
            num_scalar_prefetch=0,
            grid=grid,
            in_specs=[
                pl.BlockSpec((Bt, S, H), lambda b: (b, 0, 0)),   # x: batch-tiled
                pl.BlockSpec((H, H), lambda b: (0, 0)),          # wd: VMEM-resident
                pl.BlockSpec((1, H), lambda b: (0, 0)),          # bd
                pl.BlockSpec((H, LP), lambda b: (0, 0)),         # wc (lane-padded)
                pl.BlockSpec((1, LP), lambda b: (0, 0)),         # bc (lane-padded)
            ],
            out_specs=(
                pl.BlockSpec((Bt, S, LP), lambda b: (b, 0, 0)),
                pl.BlockSpec((Bt, S), lambda b: (b, 0)),
            ),
        ),
        compiler_params=pltpu.CompilerParams(
            dimension_semantics=("parallel",),                   # independent batch blocks
            vmem_limit_bytes=_vmem_limit_bytes(Bt, S, H, LP),
        ),
    )(x_bf, wd_bf, bd, wc_pad, bc_pad)

    # Module API returns [B, S, L] f32 logits; slice off the lane padding.
    # (v5e note: a consumer that accepts the padded / bf16 slab could skip this copy.)
    return logits_pad[..., :L], yhat


def ner_dense_head_ref(x, wd, bd, wc, bc):
    """Pure-JAX reference with the same mixed-precision matmuls (bf16 in, f32 acc)."""
    B, S, H = x.shape
    h = jnp.tanh(
        jnp.dot(x.reshape(B * S, H).astype(jnp.bfloat16), wd.astype(jnp.bfloat16),
                preferred_element_type=jnp.float32) + bd[0])
    z = (jnp.dot(h.astype(jnp.bfloat16), wc.astype(jnp.bfloat16),
                 preferred_element_type=jnp.float32) + bc[0]).reshape(B, S, -1)
    logits = jax.nn.softmax(z, axis=1)   # dim=1 == sequence axis, as in the module
    return logits, jnp.argmax(logits, axis=-1).astype(jnp.int32)


if __name__ == "__main__":
    B, S, H, L = 2, 8, 32, 3   # batch, seq, hidden_size, label_num

    key = jax.random.PRNGKey(0)
    kx, kwd, kbd, kwc, kbc = jax.random.split(key, 5)

    # synthetic encoder_output.last_hidden_state
    x = jax.random.normal(kx, (B, S, H), dtype=jnp.float32)

    # deterministic parameter init (shapes per Dense_head.__init__)
    wd = jax.random.normal(kwd, (H, H), dtype=jnp.float32) * 0.05   # dense weight [in, out]
    bd = jax.random.normal(kbd, (1, H), dtype=jnp.float32) * 0.05
    wc = jax.random.normal(kwc, (H, L), dtype=jnp.float32) * 0.05   # classifier weight [in, out]
    bc = jax.random.normal(kbc, (1, L), dtype=jnp.float32) * 0.05

    logits, y_hat = ner_dense_head(x, wd, bd, wc, bc)
    jax.block_until_ready((logits, y_hat))

    # sanity check against pure-JAX reference (tolerance covers the EUP approx reciprocal)
    logits_ref, y_hat_ref = ner_dense_head_ref(x, wd, bd, wc, bc)
    assert jnp.allclose(logits, logits_ref, atol=5e-3, rtol=5e-3), \
        float(jnp.max(jnp.abs(logits - logits_ref)))
    assert jnp.array_equal(y_hat, y_hat_ref)

    print("KERNEL_OK")
</pallas_src>

<mosaic_0001>
module attributes {stable_mosaic.version = 11 : i64} {
  func.func @dense_head_kernel(%arg0: i32, %arg1: memref<2x8x32xbf16, #tpu.memory_space<vmem>>, %arg2: memref<32x32xbf16, #tpu.memory_space<vmem>>, %arg3: memref<1x32xf32, #tpu.memory_space<vmem>>, %arg4: memref<32x128xbf16, #tpu.memory_space<vmem>>, %arg5: memref<1x128xf32, #tpu.memory_space<vmem>>, %arg6: memref<2x8x128xf32, #tpu.memory_space<vmem>>, %arg7: memref<2x8xi32, #tpu.memory_space<vmem>>) attributes {dimension_semantics = [#tpu.dimension_semantics<parallel>], iteration_bounds = array<i64: 1>, scalar_prefetch = 0 : i64, scratch_operands = 0 : i64, tpu.core_type = #tpu.core_type<tc>, window_params = [{transform_indices = @transform_0, window_bounds = array<i64: 2, 8, 32>}, {pipeline_mode = #tpu.pipeline_mode<synchronous>, transform_indices = @transform_1, window_bounds = array<i64: 32, 32>}, {pipeline_mode = #tpu.pipeline_mode<synchronous>, transform_indices = @transform_2, window_bounds = array<i64: 1, 32>}, {pipeline_mode = #tpu.pipeline_mode<synchronous>, transform_indices = @transform_3, window_bounds = array<i64: 32, 128>}, {pipeline_mode = #tpu.pipeline_mode<synchronous>, transform_indices = @transform_4, window_bounds = array<i64: 1, 128>}, {transform_indices = @transform_5, window_bounds = array<i64: 2, 8, 128>}, {transform_indices = @transform_6, window_bounds = array<i64: 2, 8>}]} {
    %c0 = arith.constant 0 : index
    %c0_0 = arith.constant 0 : index
    %0 = vector.load %arg2[%c0, %c0_0] : memref<32x32xbf16, #tpu.memory_space<vmem>>, vector<32x32xbf16>
    %c0_1 = arith.constant 0 : index
    %c0_2 = arith.constant 0 : index
    %1 = vector.load %arg3[%c0_1, %c0_2] : memref<1x32xf32, #tpu.memory_space<vmem>>, vector<1x32xf32>
    %c0_3 = arith.constant 0 : index
    %c0_4 = arith.constant 0 : index
    %2 = vector.load %arg4[%c0_3, %c0_4] : memref<32x128xbf16, #tpu.memory_space<vmem>>, vector<32x128xbf16>
    %c0_5 = arith.constant 0 : index
    %c0_6 = arith.constant 0 : index
    %3 = vector.load %arg5[%c0_5, %c0_6] : memref<1x128xf32, #tpu.memory_space<vmem>>, vector<1x128xf32>
    %c0_7 = arith.constant 0 : index
    %c0_8 = arith.constant 0 : index
    %c0_9 = arith.constant 0 : index
    %4 = vector.load %arg1[%c0_7, %c0_8, %c0_9] : memref<2x8x32xbf16, #tpu.memory_space<vmem>>, vector<1x8x32xbf16>
    %5 = vector.shape_cast %4 : vector<1x8x32xbf16> to vector<8x32xbf16>
    %cst = arith.constant dense<0.000000e+00> : vector<8x32xf32>
    %6 = tpu.matmul %5, %0, %cst {dimension_numbers = #tpu.dot_dimension_numbers<[1], [0], [0], [1], [0, 0, 1, 1], [], []>} : vector<8x32xbf16>, vector<32x32xbf16>, vector<8x32xf32> -> vector<8x32xf32>
    %7 = vector.broadcast %1 : vector<1x32xf32> to vector<8x32xf32>
    %8 = arith.addf %6, %7 : vector<8x32xf32>
    %9 = math.tanh %8 : vector<8x32xf32>
    %10 = arith.truncf %9 : vector<8x32xf32> to vector<8x32xbf16>
    %cst_10 = arith.constant dense<0.000000e+00> : vector<8x128xf32>
    %11 = tpu.matmul %10, %2, %cst_10 {dimension_numbers = #tpu.dot_dimension_numbers<[1], [0], [0], [1], [0, 0, 1, 1], [], []>} : vector<8x32xbf16>, vector<32x128xbf16>, vector<8x128xf32> -> vector<8x128xf32>
    %12 = vector.broadcast %3 : vector<1x128xf32> to vector<8x128xf32>
    %13 = arith.addf %11, %12 : vector<8x128xf32>
    %cst_11 = arith.constant dense<0xFF800000> : vector<128xf32>
    %14 = vector.multi_reduction <maximumf>, %13, %cst_11 [0] : vector<8x128xf32> to vector<128xf32>
    %15 = vector.shape_cast %14 : vector<128xf32> to vector<1x128xf32>
    %16 = vector.broadcast %15 : vector<1x128xf32> to vector<8x128xf32>
    %17 = arith.subf %13, %16 : vector<8x128xf32>
    %18 = math.exp %17 : vector<8x128xf32>
    %cst_12 = arith.constant dense<0.000000e+00> : vector<128xf32>
    %19 = vector.multi_reduction <add>, %18, %cst_12 [0] : vector<8x128xf32> to vector<128xf32>
    %20 = vector.shape_cast %19 : vector<128xf32> to vector<1x128xf32>
    %21 = tpu.reciprocal %20 {approx = true} : vector<1x128xf32> -> vector<1x128xf32>
    %22 = vector.broadcast %21 : vector<1x128xf32> to vector<8x128xf32>
    %23 = arith.mulf %18, %22 : vector<8x128xf32>
    %c0_13 = arith.constant 0 : index
    %c0_14 = arith.constant 0 : index
    %c0_15 = arith.constant 0 : index
    %24 = vector.load %arg6[%c0_13, %c0_14, %c0_15] : memref<2x8x128xf32, #tpu.memory_space<vmem>>, vector<1x8x128xf32>
    %25 = vector.shape_cast %24 : vector<1x8x128xf32> to vector<8x128xf32>
    %26 = vector.shape_cast %23 : vector<8x128xf32> to vector<1x8x128xf32>
    tpu.vector_store %arg6[%c0_13, %c0_14, %c0_15], %26 {strides = array<i32>} : memref<2x8x128xf32, #tpu.memory_space<vmem>>, vector<1x8x128xf32>,
    %27 = vector.broadcast %15 : vector<1x128xf32> to vector<8x128xf32>
    %28 = arith.subf %13, %27 : vector<8x128xf32>
    %29 = math.log %20 : vector<1x128xf32>
    %30 = vector.broadcast %29 : vector<1x128xf32> to vector<8x128xf32>
    %31 = arith.subf %28, %30 : vector<8x128xf32>
    %32 = tpu.iota {dimensions = array<i32: 1>} : vector<8x128xi32>
    %c3_i32 = arith.constant 3 : i32
    %33 = vector.broadcast %c3_i32 : i32 to vector<8x128xi32>
    %34 = arith.cmpi slt, %32, %33 : vector<8x128xi32>
    %cst_16 = arith.constant 0xFF800000 : f32
    %35 = vector.broadcast %cst_16 : f32 to vector<8x128xf32>
    %36 = arith.select %34, %31, %35 : vector<8x128xi1>, vector<8x128xf32>
    %cst_17 = arith.constant dense<0xFF800000> : vector<8xf32>
    %37 = vector.multi_reduction <maximumf>, %36, %cst_17 [1] : vector<8x128xf32> to vector<8xf32>
    %38 = vector.shape_cast %37 : vector<8xf32> to vector<8x1xf32>
    %39 = vector.broadcast %38 : vector<8x1xf32> to vector<8x128xf32>
    %40 = arith.cmpf oeq, %36, %39 : vector<8x128xf32>
    %c128_i32 = arith.constant 128 : i32
    %41 = vector.broadcast %c128_i32 : i32 to vector<8x128xi32>
    %42 = arith.select %40, %32, %41 : vector<8x128xi1>, vector<8x128xi32>
    %cst_18 = arith.constant dense<2147483647> : vector<8xi32>
    %43 = vector.multi_reduction <minsi>, %42, %cst_18 [1] : vector<8x128xi32> to vector<8xi32>
    %c0_19 = arith.constant 0 : index
    %c0_20 = arith.constant 0 : index
    %44 = vector.load %arg7[%c0_19, %c0_20] : memref<2x8xi32, #tpu.memory_space<vmem>>, vector<1x8xi32>
    %45 = vector.shape_cast %44 : vector<1x8xi32> to vector<8xi32>
    %46 = vector.shape_cast %43 : vector<8xi32> to vector<1x8xi32>
    tpu.vector_store %arg7[%c0_19, %c0_20], %46 {strides = array<i32>} : memref<2x8xi32, #tpu.memory_space<vmem>>, vector<1x8xi32>,
    %c1 = arith.constant 1 : index
    %c0_21 = arith.constant 0 : index
    %c0_22 = arith.constant 0 : index
    %47 = vector.load %arg1[%c1, %c0_21, %c0_22] : memref<2x8x32xbf16, #tpu.memory_space<vmem>>, vector<1x8x32xbf16>
    %48 = vector.shape_cast %47 : vector<1x8x32xbf16> to vector<8x32xbf16>
    %cst_23 = arith.constant dense<0.000000e+00> : vector<8x32xf32>
    %49 = tpu.matmul %48, %0, %cst_23 {dimension_numbers = #tpu.dot_dimension_numbers<[1], [0], [0], [1], [0, 0, 1, 1], [], []>} : vector<8x32xbf16>, vector<32x32xbf16>, vector<8x32xf32> -> vector<8x32xf32>
    %50 = vector.broadcast %1 : vector<1x32xf32> to vector<8x32xf32>
    %51 = arith.addf %49, %50 : vector<8x32xf32>
    %52 = math.tanh %51 : vector<8x32xf32>
    %53 = arith.truncf %52 : vector<8x32xf32> to vector<8x32xbf16>
    %cst_24 = arith.constant dense<0.000000e+00> : vector<8x128xf32>
    %54 = tpu.matmul %53, %2, %cst_24 {dimension_numbers = #tpu.dot_dimension_numbers<[1], [0], [0], [1], [0, 0, 1, 1], [], []>} : vector<8x32xbf16>, vector<32x128xbf16>, vector<8x128xf32> -> vector<8x128xf32>
    %55 = vector.broadcast %3 : vector<1x128xf32> to vector<8x128xf32>
    %56 = arith.addf %54, %55 : vector<8x128xf32>
    %cst_25 = arith.constant dense<0xFF800000> : vector<128xf32>
    %57 = vector.multi_reduction <maximumf>, %56, %cst_25 [0] : vector<8x128xf32> to vector<128xf32>
    %58 = vector.shape_cast %57 : vector<128xf32> to vector<1x128xf32>
    %59 = vector.broadcast %58 : vector<1x128xf32> to vector<8x128xf32>
    %60 = arith.subf %56, %59 : vector<8x128xf32>
    %61 = math.exp %60 : vector<8x128xf32>
    %cst_26 = arith.constant dense<0.000000e+00> : vector<128xf32>
    %62 = vector.multi_reduction <add>, %61, %cst_26 [0] : vector<8x128xf32> to vector<128xf32>
    %63 = vector.shape_cast %62 : vector<128xf32> to vector<1x128xf32>
    %64 = tpu.reciprocal %63 {approx = true} : vector<1x128xf32> -> vector<1x128xf32>
    %65 = vector.broadcast %64 : vector<1x128xf32> to vector<8x128xf32>
    %66 = arith.mulf %61, %65 : vector<8x128xf32>
    %c1_27 = arith.constant 1 : index
    %c0_28 = arith.constant 0 : index
    %c0_29 = arith.constant 0 : index
    %67 = vector.load %arg6[%c1_27, %c0_28, %c0_29] : memref<2x8x128xf32, #tpu.memory_space<vmem>>, vector<1x8x128xf32>
    %68 = vector.shape_cast %67 : vector<1x8x128xf32> to vector<8x128xf32>
    %69 = vector.shape_cast %66 : vector<8x128xf32> to vector<1x8x128xf32>
    tpu.vector_store %arg6[%c1_27, %c0_28, %c0_29], %69 {strides = array<i32>} : memref<2x8x128xf32, #tpu.memory_space<vmem>>, vector<1x8x128xf32>,
    %70 = vector.broadcast %58 : vector<1x128xf32> to vector<8x128xf32>
    %71 = arith.subf %56, %70 : vector<8x128xf32>
    %72 = math.log %63 : vector<1x128xf32>
    %73 = vector.broadcast %72 : vector<1x128xf32> to vector<8x128xf32>
    %74 = arith.subf %71, %73 : vector<8x128xf32>
    %75 = tpu.iota {dimensions = array<i32: 1>} : vector<8x128xi32>
    %c3_i32_30 = arith.constant 3 : i32
    %76 = vector.broadcast %c3_i32_30 : i32 to vector<8x128xi32>
    %77 = arith.cmpi slt, %75, %76 : vector<8x128xi32>
    %cst_31 = arith.constant 0xFF800000 : f32
    %78 = vector.broadcast %cst_31 : f32 to vector<8x128xf32>
    %79 = arith.select %77, %74, %78 : vector<8x128xi1>, vector<8x128xf32>
    %cst_32 = arith.constant dense<0xFF800000> : vector<8xf32>
    %80 = vector.multi_reduction <maximumf>, %79, %cst_32 [1] : vector<8x128xf32> to vector<8xf32>
    %81 = vector.shape_cast %80 : vector<8xf32> to vector<8x1xf32>
    %82 = vector.broadcast %81 : vector<8x1xf32> to vector<8x128xf32>
    %83 = arith.cmpf oeq, %79, %82 : vector<8x128xf32>
    %c128_i32_33 = arith.constant 128 : i32
    %84 = vector.broadcast %c128_i32_33 : i32 to vector<8x128xi32>
    %85 = arith.select %83, %75, %84 : vector<8x128xi1>, vector<8x128xi32>
    %cst_34 = arith.constant dense<2147483647> : vector<8xi32>
    %86 = vector.multi_reduction <minsi>, %85, %cst_34 [1] : vector<8x128xi32> to vector<8xi32>
    %c1_35 = arith.constant 1 : index
    %c0_36 = arith.constant 0 : index
    %87 = vector.load %arg7[%c1_35, %c0_36] : memref<2x8xi32, #tpu.memory_space<vmem>>, vector<1x8xi32>
    %88 = vector.shape_cast %87 : vector<1x8xi32> to vector<8xi32>
    %89 = vector.shape_cast %86 : vector<8xi32> to vector<1x8xi32>
    tpu.vector_store %arg7[%c1_35, %c0_36], %89 {strides = array<i32>} : memref<2x8xi32, #tpu.memory_space<vmem>>, vector<1x8xi32>,
    return
  }
  func.func @transform_0(%arg0: i32) -> (i32, i32, i32) {
    %c0_i32 = arith.constant 0 : i32
    %c0_i32_0 = arith.constant 0 : i32
    %c0_i32_1 = arith.constant 0 : i32
    return %arg0, %c0_i32, %c0_i32_0 : i32, i32, i32
  }
  func.func @transform_1(%arg0: i32) -> (i32, i32) {
    %c0_i32 = arith.constant 0 : i32
    %c0_i32_0 = arith.constant 0 : i32
    %c0_i32_1 = arith.constant 0 : i32
    return %c0_i32, %c0_i32_0 : i32, i32
  }
  func.func @transform_2(%arg0: i32) -> (i32, i32) {
    %c0_i32 = arith.constant 0 : i32
    %c0_i32_0 = arith.constant 0 : i32
    %c0_i32_1 = arith.constant 0 : i32
    return %c0_i32, %c0_i32_0 : i32, i32
  }
  func.func @transform_3(%arg0: i32) -> (i32, i32) {
    %c0_i32 = arith.constant 0 : i32
    %c0_i32_0 = arith.constant 0 : i32
    %c0_i32_1 = arith.constant 0 : i32
    return %c0_i32, %c0_i32_0 : i32, i32
  }
  func.func @transform_4(%arg0: i32) -> (i32, i32) {
    %c0_i32 = arith.constant 0 : i32
    %c0_i32_0 = arith.constant 0 : i32
    %c0_i32_1 = arith.constant 0 : i32
    return %c0_i32, %c0_i32_0 : i32, i32
  }
  func.func @transform_5(%arg0: i32) -> (i32, i32, i32) {
    %c0_i32 = arith.constant 0 : i32
    %c0_i32_0 = arith.constant 0 : i32
    %c0_i32_1 = arith.constant 0 : i32
    return %arg0, %c0_i32, %c0_i32_0 : i32, i32, i32
  }
  func.func @transform_6(%arg0: i32) -> (i32, i32) {
    %c0_i32 = arith.constant 0 : i32
    %c0_i32_0 = arith.constant 0 : i32
    return %arg0, %c0_i32 : i32, i32
  }
}

</mosaic_0001>

<bundles_post_ra>
// kernel: tpu_custom_call.1
= control target key start
LH: loop header
LB: loop body
LE: loop exit
PB: predicated region body
PF: predicated region fallthrough
CT: control target
= control target key end

     0   :  { %12 = vsyncpa [#allocation3], 0  ;;  %s766_s0 = inlined_call_operand.hbm [shape: bf16[2,8,32], index: 0, kind: input, shape index: {}]   ;;  %s767_s1 = inlined_call_operand.hbm [shape: bf16[32,32], index: 1, kind: input, shape index: {}]   ;;  %s768_s2 = inlined_call_operand.vmem [shape: f32[1,32], index: 2, kind: input, shape index: {}]   ;;  %s769_s3 = inlined_call_operand.hbm [shape: bf16[32,128], index: 3, kind: input, shape index: {}]   ;;  %s770_s4 = inlined_call_operand.vmem [shape: f32[1,128], index: 4, kind: input, shape index: {}]   ;;  %s771_s5 = inlined_call_operand.hbm [shape: f32[2,8,128], index: 5, kind: output, shape index: {0}]   ;;  %s772_s6 = inlined_call_operand.hbm [shape: s32[2,8], index: 6, kind: output, shape index: {1}]  }
   0x1   :  { %13 = vsyncpa [#allocation6], 0 }
   0x2   :  { %14 = vsyncpa [#allocation4], 0 }
   0x3   :  { %15 = vsyncpa [#allocation10], 0  ;;  %s622_s21 = smov [#allocation5]   ;;  %s623_s23 = smov [#allocation2]  }
   0x4   :  { %s33_s22 = sshll.u32 %s622_s21, 4  ;;  %s21_s24 = sshll.u32 %s623_s23, 4  ;;  %s34_s22 = int_to_ptr.vmem [resolvable:$true] %s33_s22  ;;  %s668_s24 = int_to_ptr.vmem [resolvable:$true] %s21_s24 }
   0x5   :  { %s504_s27 = scalar_lea.hbm %s767_s1, 256 }
   0x6   :  { %p505_p0 = scmp.ne.s32.totalorder %s767_s1, %s504_s27  ;;  %p508_p1 = scmp.lt.u32.totalorder %s504_s27, %s767_s1 }
   0x8   :  { %p510_p2 = pnand %p508_p1, %p505_p0 }
   0xa   :  { %513 = shalt.err (!%p510_p2)
}
   0xb   :  { %s514_s8 = scalar_lea.vmem %s34_s22, 256  ;;  %p519_p4 = scmp.lt.s32.totalorder %s34_s22, %s34_s22 }
   0xc   :  { %p515_p3 = scmp.ne.s32.totalorder %s34_s22, %s514_s8  ;;  %p520_p5 = scmp.lt.s32.totalorder %s514_s8, %s514_s8 }
   0xe   :  { %p521_p6 = por %p520_p5, %p519_p4 }
  0x10   :  { %p522_p7 = pnand %p521_p6, %p515_p3 }
  0x12   :  { %525 = shalt.err (!%p522_p7)
}
  0x13   :  { %s624_s9 = smov 64   ;;  %s625_s10 = smov 4  }
  0x14   :  { %39 = dma.hbm_to_vmem [thread:$0]  %s767_s1, 256, %s34_s22, [#allocation6], %s624_s9, %s624_s9, %s625_s10  }
  0x15   :  { %s526_s15 = scalar_lea.hbm %s766_s0, 128 }
  0x16   :  { %p527_p8 = scmp.ne.s32.totalorder %s766_s0, %s526_s15  ;;  %p530_p9 = scmp.lt.u32.totalorder %s526_s15, %s766_s0 }
  0x18   :  { %p532_p10 = pnand %p530_p9, %p527_p8 }
  0x1a   :  { %535 = shalt.err (!%p532_p10)
}
  0x1b   :  { %s536_s20 = scalar_lea.vmem %s668_s24, 128  ;;  %p541_p12 = scmp.lt.s32.totalorder %s668_s24, %s668_s24 }
  0x1c   :  { %p537_p11 = scmp.ne.s32.totalorder %s668_s24, %s536_s20  ;;  %p542_p13 = scmp.lt.s32.totalorder %s536_s20, %s536_s20 }
  0x1e   :  { %p543_p0 = por %p542_p13, %p541_p12 }
  0x20   :  { %p544_p1 = pnand %p543_p0, %p537_p11 }
  0x22   :  { %547 = shalt.err (!%p544_p1)
}
  0x23   :  { %27 = dma.hbm_to_vmem [thread:$0]  %s766_s0, 128, %s668_s24, [#allocation3], %s624_s9, %s624_s9, %s625_s10  }
  0x24   :  { %s626_s22 = smov [#allocation7]   ;;  %s548_s27 = scalar_lea.hbm %s769_s3, 256 }
  0x25   :  { %s47_s23 = sshll.u32 %s626_s22, 4  ;;  %p549_p2 = scmp.ne.s32.totalorder %s769_s3, %s548_s27  ;;  %s48_s23 = int_to_ptr.vmem [resolvable:$true] %s47_s23 }
  0x26   :  { %p552_p3 = scmp.lt.u32.totalorder %s548_s27, %s769_s3 }
  0x28   :  { %p554_p4 = pnand %p552_p3, %p549_p2 }
  0x2a   :  { %557 = shalt.err (!%p554_p4)
}
  0x2b   :  { %s558_s8 = scalar_lea.vmem %s48_s23, 256  ;;  %p563_p6 = scmp.lt.s32.totalorder %s48_s23, %s48_s23 }
  0x2c   :  { %p559_p5 = scmp.ne.s32.totalorder %s48_s23, %s558_s8  ;;  %p564_p7 = scmp.lt.s32.totalorder %s558_s8, %s558_s8 }
  0x2e   :  { %p565_p8 = por %p564_p7, %p563_p6 }
  0x30   :  { %p566_p9 = pnand %p565_p8, %p559_p5 }
  0x32   :  { %569 = shalt.err (!%p566_p9)
}
  0x33   :  { %53 = dma.hbm_to_vmem [thread:$0]  %s769_s3, 256, %s48_s23, [#allocation6], %s624_s9, %s624_s9, %s625_s10  }
  0x34   :  { %614 = dma.done.wait [#allocation3], 128  }
  0x35   :  { %615 = vsyncadd [#allocation3], 4294967168 }
  0x36   :  { %616 = dma.done.wait [#allocation6], 512  }
  0x37   :  { %617 = vsyncadd [#allocation6], 4294966784  ;;  %v627_v0 = vmov 0.0   ;;  %vm628_vm0 = vmmov 0   ;;  %v484_v1 = vld [vmem:[#allocation5] sm:$0xff]   ;;  %v485_v2 = vld [vmem:[#allocation5 + $0x8] sm:$0xff]   ;;  %v223_v61 = vlaneseq }
  0x38   :  { %441 = vmatprep.subr.bf16.mxu0 %v627_v0  ;;  %445 = vmatprep.mubr.msk.bf16.mxu0 %vm628_vm0, %v627_v0  ;;  %v76_v3 = vld [vmem:[#allocation2] sm:$0xf]  ;;  %vm95_vm1 = vcmask 261120   ;;  %v252_v4 = vld [vmem:[#allocation2 + $0x4] sm:$0xf]  ;;  %v486_v5 = vld [vmem:[#allocation7] sm:$0xff]  }
  0x39   :  { %449 = vmatprep.subr.bf16.mxu1 %v627_v0  ;;  %453 = vmatprep.mubr.msk.bf16.mxu1 %vm628_vm0, %v627_v0  ;;  %v487_v6 = vld [vmem:[#allocation7 + $0x8] sm:$0xff]  }
  0x3a   :  { %442 = vmatpush3.bf16.msra.mxu0 %v484_v1  ;;  %450 = vmatpush3.bf16.msra.mxu1 %v486_v5  ;;  %v419_v7 = vld [vmem:[%s768_s2] ss:$0 sm:$0xff] }
  0x3b   :  { %443 = vmatprep.subr.bf16.mxu0 %v627_v0  ;;  %451 = vmatprep.subr.bf16.mxu1 %v627_v0  ;;  %v423_v22 = vld [vmem:[%s770_s4] ss:$0 sm:$0xff]  ;;  %s629_s4 = smov [#allocation8]  }
  0x3c   :  { %s392_s11 = sshll.u32 %s629_s4, 4  ;;  %s393_s11 = int_to_ptr.vmem [resolvable:$true] %s392_s11 }
  0x3d   :  { %s570_s12 = scalar_lea.vmem %s393_s11, 256  ;;  %p575_p11 = scmp.lt.s32.totalorder %s393_s11, %s393_s11 }
  0x3e   :  { %444 = vmatpush3.bf16.msra.mxu0 %v485_v2  ;;  %452 = vmatpush3.bf16.msra.mxu1 %v487_v6  ;;  %p571_p10 = scmp.ne.s32.totalorder %s393_s11, %s570_s12  ;;  %p576_p12 = scmp.lt.s32.totalorder %s570_s12, %s570_s12 }
  0x3f   :  { %457 = vmatprep.subr.bf16.mxu0 %v627_v0  ;;  %465 = vmatprep.subr.bf16.mxu1 %v627_v0 }
  0x40   :  { %p577_p13 = por %p576_p12, %p575_p11 }
  0x41   :  { %446 = vmatmul.mubr.msk.bf16.vlgmr.msra.gmra.mrb[0].mxu0 %vm95_vm1, %v76_v3 }
  0x42   :  { %458 = vmatpush3.bf16.msra.mxu0 %v484_v1  ;;  %461 = vmatprep.mubr.msk.bf16.mxu0 %vm628_vm0, %v627_v0  ;;  %p578_p0 = pnand %p577_p13, %p571_p10 }
  0x43   :  { %459 = vmatprep.subr.bf16.mxu0 %v627_v0 }
  0x46   :  { %460 = vmatpush3.bf16.msra.mxu0 %v485_v2 }
  0x49   :  { %462 = vmatmul.mubr.msk.bf16.vlgmr.msra.gmra.mrb[4].mxu0 %vm95_vm1, %v252_v4 }
 0x114   :  { %v133_v8 = vpop.f32.mrb[0].mxu0 }
 0x115   :  { %v134_v9 = vadd.f32 %v419_v7, %v133_v8  ;;  %v447_v10 = vpop.f32.mrb[1].mxu0 }
 0x116   :  { %v136_v11 = vpop.f32.mrb[2].mxu0 }
 0x117   :  { %488 = vtanh.f32 %v134_v9  ;;  %v448_v12 = vpop.f32.mrb[3].mxu0 }
 0x11c   :  { %v290_v13 = vpop.f32.mrb[4].mxu0 }
 0x11d   :  { %v291_v14 = vadd.f32 %v419_v7, %v290_v13  ;;  %v463_v15 = vpop.f32.mrb[5].mxu0 }
 0x11e   :  { %v293_v16 = vpop.f32.mrb[6].mxu0 }
 0x11f   :  { %490 = vtanh.f32 %v291_v14  ;;  %v464_v17 = vpop.f32.mrb[7].mxu0 }
 0x121   :  { %v489_v18 = vpop.eup %488 }
 0x122   :  { %v140_v19 = vpack.c.bf16 %v489_v18, %v489_v18 }
 0x124   :  { %454 = vmatmul.mubr.msk.bf16.vlgmr.msra.gmra.mrb[0].mxu1 %vm95_vm1, %v140_v19 }
 0x125   :  { %466 = vmatpush3.bf16.msra.mxu1 %v486_v5  ;;  %469 = vmatprep.mubr.msk.bf16.mxu1 %vm628_vm0, %v627_v0 }
 0x126   :  { %467 = vmatprep.subr.bf16.mxu1 %v627_v0  ;;  %v735_v0 = vand.u32 127, %v223_v61 }
 0x128   :  { %vm225_vm2 = vcmp.lt.s32.totalorder %v735_v0, 3 }
 0x129   :  { %v491_v20 = vpop.eup %490  ;;  %468 = vmatpush3.bf16.msra.mxu1 %v487_v6 }
 0x12a   :  { %v297_v21 = vpack.c.bf16 %v491_v20, %v491_v20 }
 0x12c   :  { %470 = vmatmul.mubr.msk.bf16.vlgmr.msra.gmra.mrb[4].mxu1 %vm95_vm1, %v297_v21 }
 0x1f7   :  { %v196_v23 = vpop.f32.mrb[0].mxu1 }
 0x1f8   :  { %v197_v24 = vadd.f32 %v423_v22, %v196_v23  ;;  %v455_v25 = vpop.f32.mrb[1].mxu1 }
 0x1f9   :  { %v199_v26 = vpop.f32.mrb[2].mxu1 }
 0x1fa   :  { %v202_v27 = vrot.slane %v197_v24, 4  ;;  %v456_v28 = vpop.f32.mrb[3].mxu1 }
 0x1fc   :  { %v203_v29 = vmax.f32 %v197_v24, %v202_v27 }
 0x1fe   :  { %v204_v30 = vrot.slane %v203_v29, 2 }
 0x1ff   :  { %v335_v31 = vpop.f32.mrb[4].mxu1 }
 0x200   :  { %v205_v32 = vmax.f32 %v203_v29, %v204_v30  ;;  %v336_v33 = vadd.f32 %v423_v22, %v335_v31  ;;  %v471_v34 = vpop.f32.mrb[5].mxu1 }
 0x201   :  { %v338_v35 = vpop.f32.mrb[6].mxu1 }
 0x202   :  { %v341_v36 = vrot.slane %v336_v33, 4  ;;  %v472_v37 = vpop.f32.mrb[7].mxu1  ;;  %v206_v38 = vrot.slane %v205_v32, 1 }
 0x204   :  { %v342_v39 = vmax.f32 %v336_v33, %v341_v36  ;;  %v207_v40 = vmax.f32 %v205_v32, %v206_v38 }
 0x206   :  { %v343_v41 = vrot.slane %v342_v39, 2  ;;  %v208_v42 = vsub.f32 %v197_v24, %v207_v40 }
 0x208   :  { %v344_v43 = vmax.f32 %v342_v39, %v343_v41  ;;  %v209_v44 = vmul.f32 1.442695, %v208_v42 }
 0x20a   :  { %492 = vpow2.f32 %v209_v44  ;;  %v345_v45 = vrot.slane %v344_v43, 1 }
 0x20c   :  { %v346_v46 = vmax.f32 %v344_v43, %v345_v45 }
 0x20e   :  { %v347_v47 = vsub.f32 %v336_v33, %v346_v46 }
 0x210   :  { %v348_v48 = vmul.f32 1.442695, %v347_v47 }
 0x212   :  { %494 = vpow2.f32 %v348_v48 }
 0x214   :  { %v493_v49 = vpop.eup %492 }
 0x215   :  { %v211_v50 = vrot.slane %v493_v49, 4 }
 0x217   :  { %v212_v51 = vadd.f32 %v493_v49, %v211_v50 }
 0x219   :  { %v213_v52 = vrot.slane %v212_v51, 2 }
 0x21b   :  { %v214_v53 = vadd.f32 %v213_v52, %v212_v51 }
 0x21c   :  { %v495_v54 = vpop.eup %494 }
 0x21d   :  { %v215_v55 = vrot.slane %v214_v53, 1  ;;  %v350_v56 = vrot.slane %v495_v54, 4 }
 0x21f   :  { %v216_v57 = vadd.f32 %v215_v55, %v214_v53  ;;  %v351_v58 = vadd.f32 %v495_v54, %v350_v56 }
 0x221   :  { %496 = vlog2.f32 %v216_v57  ;;  %v352_v59 = vrot.slane %v351_v58, 2 }
 0x222   :  { %498 = vrcp.f32 %v216_v57 }
 0x223   :  { %v353_v60 = vadd.f32 %v352_v59, %v351_v58 }
 0x225   :  { %v354_v62 = vrot.slane %v353_v60, 1 }
 0x227   :  { %v355_v63 = vadd.f32 %v354_v62, %v353_v60 }
 0x229   :  { %500 = vlog2.f32 %v355_v63 }
 0x22a   :  { %502 = vrcp.f32 %v355_v63 }
 0x22b   :  { %v497_v1 = vpop.eup %496 }
 0x22c   :  { %v499_v2 = vpop.eup %498  ;;  %v221_v3 = vmul.f32 0.6931472, %v497_v1 }
 0x22d   :  { %v218_v4 = vmul.f32 %v499_v2, %v493_v49 }
 0x22e   :  { %v222_v5 = vsub.f32 %v208_v42, %v221_v3 }
 0x22f   :  { %219 = vst [vmem:[#allocation8] sm:$0xff] %v218_v4 }
 0x230   :  { %v226_v6 = vsel %vm225_vm2, %v222_v5, -inf }
 0x231   :  { %227 = vmax.xlane.f32.xlu0 %v226_v6 }
 0x233   :  { %v501_v7 = vpop.eup %500 }
 0x234   :  { %v503_v8 = vpop.eup %502  ;;  %v361_v9 = vmul.f32 0.6931472, %v501_v7 }
 0x235   :  { %v357_v10 = vmul.f32 %v503_v8, %v495_v54 }
 0x236   :  { %v362_v11 = vsub.f32 %v347_v47, %v361_v9 }
 0x237   :  { %359 = vst [vmem:[#allocation8 + $0x8] sm:$0xff] %v357_v10 }
 0x238   :  { %v363_v12 = vsel %vm225_vm2, %v362_v11, -inf }
 0x239   :  { %364 = vmax.xlane.f32.xlu0 %v363_v12 }
 0x2be   :  { %v228_v13 = vpop.xlane.xlu0 %227 }
 0x2bf   :  { %vm229_vm3 = vcmp.eq.f32.partialorder %v226_v6, %v228_v13 }
 0x2c0   :  { %v230_v14 = vsel %vm229_vm3, %v735_v0, 128 }
 0x2c1   :  { %v232_v15 = vshra.s32 %v230_v14, 16  ;;  %v231_v21 = vand.u32 65535, %v230_v14 }
 0x2c3   :  { %v234_v16 = vcvt.s32.f32 %v232_v15  ;;  %v233_v23 = vcvt.s32.f32 %v231_v21 }
 0x2c5   :  { %235 = vmin.xlane.f32.xlu1 %v234_v16 }
 0x2c6   :  { %v365_v17 = vpop.xlane.xlu0 %364 }
 0x2c7   :  { %vm366_vm4 = vcmp.eq.f32.partialorder %v363_v12, %v365_v17 }
 0x2c8   :  { %v367_v18 = vsel %vm366_vm4, %v735_v0, 128 }
 0x2c9   :  { %v369_v19 = vshra.s32 %v367_v18, 16  ;;  %v368_v25 = vand.u32 65535, %v367_v18 }
 0x2cb   :  { %v371_v20 = vcvt.s32.f32 %v369_v19  ;;  %v370_v27 = vcvt.s32.f32 %v368_v25 }
 0x2cd   :  { %372 = vmin.xlane.f32.xlu1 %v371_v20 }
 0x352   :  { %v236_v22 = vpop.xlane.xlu1 %235 }
 0x353   :  { %vm237_vm5 = vcmp.eq.f32.partialorder %v234_v16, %v236_v22 }
 0x354   :  { %v238_v24 = vsel %vm237_vm5, %v233_v23, inf }
 0x355   :  { %239 = vmin.xlane.f32.xlu0 %v238_v24 }
 0x35a   :  { %v373_v26 = vpop.xlane.xlu1 %372 }
 0x35b   :  { %vm374_vm6 = vcmp.eq.f32.partialorder %v371_v20, %v373_v26 }
 0x35c   :  { %v375_v28 = vsel %vm374_vm6, %v370_v27, inf }
 0x35d   :  { %376 = vmin.xlane.f32.xlu1 %v375_v28 }
 0x35e   :  { %581 = shalt.err (!%p578_p0)
}
 0x35f   :  { %s582_s15 = scalar_lea.hbm %s771_s5, 256 }
 0x360   :  { %p583_p1 = scmp.ne.s32.totalorder %s771_s5, %s582_s15  ;;  %p586_p2 = scmp.lt.u32.totalorder %s582_s15, %s771_s5 }
 0x362   :  { %p588_p3 = pnand %p586_p2, %p583_p1 }
 0x364   :  { %591 = shalt.err (!%p588_p3)
}
 0x365   :  { %s630_s20 = smov 128   ;;  %s631_s1 = smov 8   ;;  %v242_v29 = vcvt.f32.s32 %v236_v22  ;;  %v246_v30 = vshrl.u32 %v223_v61, 7  ;;  %vm249_vm7 = vcmask 57344   ;;  %v379_v36 = vcvt.f32.s32 %v373_v26 }
 0x366   :  { %398 = dma.vmem_to_hbm [thread:$0]  %s393_s11, 256, %s771_s5, [#allocation4], %s630_s20, %s630_s20, %s631_s1  }
 0x367   :  { %v243_v32 = vshll.u32 %v242_v29, 16  ;;  %v247_v33 = vsub.s32 %v735_v0, %v246_v30  ;;  %v380_v39 = vshll.u32 %v379_v36, 16  ;;  %s632_s23 = smov [#allocation9]  }
 0x368   :  { %s405_s25 = sshll.u32 %s632_s23, 4  ;;  %s406_s25 = int_to_ptr.vmem [resolvable:$true] %s405_s25 }
 0x369   :  { %s592_s5 = scalar_lea.vmem %s406_s25, 32  ;;  %p597_p5 = scmp.lt.s32.totalorder %s406_s25, %s406_s25 }
 0x36a   :  { %p593_p4 = scmp.ne.s32.totalorder %s406_s25, %s592_s5  ;;  %p598_p6 = scmp.lt.s32.totalorder %s592_s5, %s592_s5 }
 0x36c   :  { %p599_p7 = por %p598_p6, %p597_p5 }
 0x36e   :  { %p600_p8 = pnand %p599_p7, %p593_p4 }
 0x3e2   :  { %v240_v31 = vpop.xlane.xlu0 %239 }
 0x3e3   :  { %v241_v34 = vcvt.f32.s32 %v240_v31 }
 0x3e5   :  { %v244_v35 = vadd.s32 %v243_v32, %v241_v34 }
 0x3e7   :  { %v248_v37 = vrot.slane %v244_v35, %v247_v33 }
 0x3e9   :  { %250 = vst.msk [vmem:[#allocation9] sm:$0x1] %vm249_vm7, %v248_v37 }
 0x3ea   :  { %v377_v38 = vpop.xlane.xlu1 %376 }
 0x3eb   :  { %v378_v40 = vcvt.f32.s32 %v377_v38 }
 0x3ed   :  { %v381_v41 = vadd.s32 %v380_v39, %v378_v40 }
 0x3ef   :  { %v385_v42 = vrot.slane %v381_v41, %v247_v33 }
 0x3f1   :  { %386 = vst.msk [vmem:[#allocation9 + $0x1] sm:$0x1] %vm249_vm7, %v385_v42 }
 0x3f2   :  { %603 = shalt.err (!%p600_p8)
}
 0x3f3   :  { %s604_s28 = scalar_lea.hbm %s772_s6, 32 }
 0x3f4   :  { %p605_p9 = scmp.ne.s32.totalorder %s772_s6, %s604_s28  ;;  %p608_p10 = scmp.lt.u32.totalorder %s604_s28, %s772_s6 }
 0x3f6   :  { %p610_p11 = pnand %p608_p10, %p605_p9 }
 0x3f8   :  { %613 = shalt.err (!%p610_p11)
}
 0x3f9   :  { %408 = dma.vmem_to_hbm [thread:$0]  %s406_s25, 32, %s772_s6, [#allocation10]  }
 0x3fa   :  { %618 = dma.done.wait [#allocation4], 256  }
 0x3fb   :  { %619 = vsyncadd [#allocation4], 4294967040 }
 0x3fc   :  { %620 = dma.done.wait [#allocation10], 32  }
 0x3fd   :  { %621 = vsyncadd [#allocation10], 4294967264 }
 0x3fe   :  { %415 = vsyncpa [#allocation3], 1 }
 0x3ff   :  { %416 = vsyncpa [#allocation6], 1 }
 0x400   :  { %417 = vsyncpa [#allocation4], 1 }
 0x401   :  { %418 = vsyncpa [#allocation10], 1 }

</bundles_post_ra>
